<compile_context>
chip_gen: v5e
topology: v5e:2x2
jax: 0.10.0
libtpu: 0.0.40
codegen_flags: <defaults>
</compile_context>

<pallas_src>
import functools

import jax
import jax.numpy as jnp
from jax.experimental import pallas as pl
from jax.experimental.pallas import tpu as pltpu


def _attention_kernel(n_keys, out_ref, ctx_ref, wmix_ref, wout_ref, b_ref,
                      y_ref, attn_ref):
    # out_ref : (TB, TQ, Hp)      ctx_ref : (TB, Tin_p, Hp)
    # wmix_ref/wout_ref : (Hp, Hp)   b_ref : (1, Hp)
    # y_ref   : (TB, TQ, Hp)      attn_ref: (TB, TQ, Tin_p)  (float32)
    out = out_ref[...]                    # native dtype
    ctx = ctx_ref[...]
    TB, TQ, Hp = out.shape
    Tin_p = ctx.shape[1]

    # scores[b] = out[b] @ ctx[b].T — contract last dims, no materialized transpose.
    scores = jnp.einsum("bqh,bkh->bqk", out, ctx,
                        preferred_element_type=jnp.float32)   # (TB, TQ, Tin_p) f32

    # Mask padded key columns (static decision: n_keys is a Python int).
    if n_keys < Tin_p:
        key_ids = jax.lax.broadcasted_iota(jnp.int32, scores.shape, 2)
        scores = jnp.where(key_ids < n_keys, scores, -jnp.inf)

    # Row softmax over the key (last) axis.
    m = jnp.max(scores, axis=-1, keepdims=True)
    p = jnp.exp(scores - m)
    denom = jnp.sum(p, axis=-1, keepdims=True)
    # Exact reciprocal: attn is a user-visible output checked to tight tolerance.
    attn = p * pl.reciprocal(denom, approx=False)             # (TB, TQ, Tin_p) f32

    # mix[b] = attn[b] @ ctx[b]
    mix = jnp.einsum("bqk,bkh->bqh", attn.astype(ctx.dtype), ctx,
                     preferred_element_type=jnp.float32)      # (TB, TQ, Hp) f32

    # linear_out(cat([mix, out], -1)) == mix @ W[:H] + out @ W[H:]
    w_mix = wmix_ref[...]
    w_out = wout_ref[...]
    mix2d = mix.astype(w_mix.dtype).reshape(TB * TQ, Hp)   # TQ % 8 == 0 -> pure view
    out2d = out.reshape(TB * TQ, Hp)
    y = jnp.dot(mix2d, w_mix, preferred_element_type=jnp.float32)
    y = y + jnp.dot(out2d, w_out, preferred_element_type=jnp.float32)
    y = jnp.tanh(y + b_ref[...].astype(jnp.float32))       # (1, Hp) broadcasts

    y_ref[...] = y.reshape(TB, TQ, Hp).astype(y_ref.dtype)
    attn_ref[...] = attn.astype(attn_ref.dtype)


def _round_up(x, m):
    return ((x + m - 1) // m) * m


def _vmem_capacity_bytes(default=64 * 1024 * 1024):
    try:
        info = pltpu.get_tpu_info()
        cap = getattr(info, "vmem_capacity_bytes", None)
        if cap:
            return int(cap)
    except Exception:
        pass
    return default


def _estimate_step_vmem(tq, tin_p, hp, itemsize):
    """Rough per-step VMEM footprint (double-buffered blocks + f32 temporaries)."""
    dbuf = 2
    blocks = dbuf * (
        tq * hp * itemsize          # out block
        + tin_p * hp * itemsize     # ctx block
        + tq * hp * itemsize        # y block
        + tq * tin_p * 4            # attn block (f32)
        + 2 * hp * hp * itemsize    # the two weight slices
        + hp * itemsize             # bias
    )
    temps = tq * (3 * tin_p + 2 * hp) * 4   # scores/p/attn + mix + y (f32)
    return blocks + temps


def _pick_tq(t_out, tin_p, hp, budget, itemsize, tq_cap):
    t8 = _round_up(t_out, 8)
    tq = min(_round_up(min(tq_cap, t8), 8), t8)
    while tq > 8 and _estimate_step_vmem(tq, tin_p, hp, itemsize) > budget:
        tq = max(8, _round_up(tq // 2, 8))
        if tq == 8:
            break
    return tq


def attention_forward(output, context, weight_t, bias, *, tq_cap=512):
    """output: (B, T_out, H), context: (B, T_in, H),
    weight_t: (2H, H) pre-transposed PyTorch Linear weight, bias: (H,)."""
    B, T_out, H = output.shape
    _, T_in, _ = context.shape
    itemsize = output.dtype.itemsize

    # Lane-dense padding: feature and key axes up to 128.
    Hp = _round_up(H, 128)
    Tin_p = _round_up(T_in, 128)

    # Derive VMEM limit / tile size from the actual chip (v7x: 64 MiB; v5e/v6e: 128).
    vmem_cap = _vmem_capacity_bytes()
    vmem_limit = max(32 * 1024 * 1024, (vmem_cap * 3) // 4)
    budget = (vmem_limit * 7) // 8

    TB = 1                                  # keeps B >= 2 parallel grid steps
    TQ = _pick_tq(T_out, Tin_p, Hp, budget, itemsize, tq_cap)
    T_out_p = _round_up(T_out, TQ)

    # Pad inputs (zeros); padded keys are masked in-kernel, padded features are
    # exact zeros so the zero-padded weight slices keep the math unchanged.
    out_p = jnp.pad(output, ((0, 0), (0, T_out_p - T_out), (0, Hp - H)))
    ctx_p = jnp.pad(context, ((0, 0), (0, Tin_p - T_in), (0, Hp - H)))
    w_mix = jnp.pad(weight_t[:H, :], ((0, Hp - H), (0, Hp - H)))
    w_out = jnp.pad(weight_t[H:, :], ((0, Hp - H), (0, Hp - H)))
    bias_p = jnp.pad(bias.reshape(1, H), ((0, 0), (0, Hp - H)))

    kernel = functools.partial(_attention_kernel, T_in)

    # Advisory cost estimate for XLA scheduling (unpadded algorithmic work).
    flops = int(2 * B * T_out * T_in * H * 2 + 2 * B * T_out * (2 * H) * H)
    transcendentals = int(B * T_out * T_in + B * T_out * H)
    bytes_accessed = int(
        out_p.size * itemsize + ctx_p.size * itemsize
        + (w_mix.size + w_out.size + bias_p.size) * itemsize
        + B * T_out_p * Hp * itemsize          # y writeback
        + B * T_out_p * Tin_p * 4)             # attn writeback (f32)

    y_p, attn_p = pl.pallas_call(
        kernel,
        out_shape=(
            jax.ShapeDtypeStruct((B, T_out_p, Hp), output.dtype),
            jax.ShapeDtypeStruct((B, T_out_p, Tin_p), jnp.float32),
        ),
        grid_spec=pltpu.PrefetchScalarGridSpec(
            num_scalar_prefetch=0,
            grid=(B // TB, T_out_p // TQ),
            in_specs=[
                pl.BlockSpec((TB, TQ, Hp), lambda bi, qi: (bi, qi, 0)),
                pl.BlockSpec((TB, Tin_p, Hp), lambda bi, qi: (bi, 0, 0)),
                pl.BlockSpec((Hp, Hp), lambda bi, qi: (0, 0)),
                pl.BlockSpec((Hp, Hp), lambda bi, qi: (0, 0)),
                pl.BlockSpec((1, Hp), lambda bi, qi: (0, 0)),
            ],
            out_specs=[
                pl.BlockSpec((TB, TQ, Hp), lambda bi, qi: (bi, qi, 0)),
                pl.BlockSpec((TB, TQ, Tin_p), lambda bi, qi: (bi, qi, 0)),
            ],
        ),
        compiler_params=pltpu.CompilerParams(
            # batch axis sharded across TensorCores; query tiles iterate per core
            # so the (TB, Tin_p, Hp) ctx DMA is elided between consecutive qi.
            dimension_semantics=("parallel", "arbitrary"),
            vmem_limit_bytes=int(vmem_limit),
        ),
        cost_estimate=pl.CostEstimate(
            flops=flops,
            transcendentals=transcendentals,
            bytes_accessed=bytes_accessed,
        ),
    )(out_p, ctx_p, w_mix, w_out, bias_p)

    # Slice padded outputs back to the caller's shapes.
    return y_p[:, :T_out, :H], attn_p[:, :T_out, :T_in]


def attention_reference(output, context, weight_t, bias):
    scores = jnp.einsum("btH,bsH->bts", output, context)
    attn = jax.nn.softmax(scores, axis=-1)
    mix = jnp.einsum("bts,bsH->btH", attn, context)
    combined = jnp.concatenate([mix, output], axis=-1)
    y = jnp.tanh(combined @ weight_t + bias[None, None, :])
    return y, attn


def _make_inputs(key, B, T_out, T_in, H):
    k1, k2, k3, k4 = jax.random.split(key, 4)
    output = jax.random.normal(k1, (B, T_out, H), dtype=jnp.float32)
    context = jax.random.normal(k2, (B, T_in, H), dtype=jnp.float32)
    # nn.Linear(2H, H): weight (H, 2H), bias (H).  Store weight transposed (2H, H).
    bound = 1.0 / jnp.sqrt(2.0 * H)
    weight = jax.random.uniform(k3, (H, 2 * H), minval=-bound, maxval=bound,
                                dtype=jnp.float32)
    bias = jax.random.uniform(k4, (H,), minval=-bound, maxval=bound,
                              dtype=jnp.float32)
    return output, context, weight.T, bias


if __name__ == "__main__":
    key = jax.random.PRNGKey(0)

    # Primary small config (matches the module's toy sizes).
    B, T_out, T_in, H = 2, 8, 8, 32
    output, context, weight_t, bias = _make_inputs(key, B, T_out, T_in, H)
    y, attn = attention_forward(output, context, weight_t, bias)
    jax.block_until_ready((y, attn))
    y_ref, attn_ref = attention_reference(output, context, weight_t, bias)
    assert jnp.allclose(y, y_ref, atol=1e-5, rtol=1e-5), "output mismatch"
    assert jnp.allclose(attn, attn_ref, atol=1e-5, rtol=1e-5), "attn mismatch"

    # Second config exercising T_out padding, key masking, and a multi-step grid.
    B2, T_out2, T_in2, H2 = 3, 12, 10, 48
    out2, ctx2, w2, b2 = _make_inputs(jax.random.PRNGKey(1), B2, T_out2, T_in2, H2)
    y2, attn2 = attention_forward(out2, ctx2, w2, b2, tq_cap=8)
    jax.block_until_ready((y2, attn2))
    y2_ref, attn2_ref = attention_reference(out2, ctx2, w2, b2)
    assert jnp.allclose(y2, y2_ref, atol=1e-5, rtol=1e-5), "output mismatch (padded)"
    assert jnp.allclose(attn2, attn2_ref, atol=1e-5, rtol=1e-5), "attn mismatch (padded)"

    print("KERNEL_OK")
</pallas_src>

<mosaic_0001>
module attributes {stable_mosaic.version = 11 : i64} {
  func.func @_attention_kernel(%arg0: i32, %arg1: i32, %arg2: memref<1x8x128xf32, #tpu.memory_space<vmem>>, %arg3: memref<1x128x128xf32, #tpu.memory_space<vmem>>, %arg4: memref<128x128xf32, #tpu.memory_space<vmem>>, %arg5: memref<128x128xf32, #tpu.memory_space<vmem>>, %arg6: memref<1x128xf32, #tpu.memory_space<vmem>>, %arg7: memref<1x8x128xf32, #tpu.memory_space<vmem>>, %arg8: memref<1x8x128xf32, #tpu.memory_space<vmem>>) attributes {dimension_semantics = [#tpu.dimension_semantics<parallel>, #tpu.dimension_semantics<arbitrary>], iteration_bounds = array<i64: 2, 1>, scalar_prefetch = 0 : i64, scratch_operands = 0 : i64, tpu.core_type = #tpu.core_type<tc>, window_params = [{transform_indices = @transform_0, window_bounds = array<i64: 1, 8, 128>}, {transform_indices = @transform_1, window_bounds = array<i64: 1, 128, 128>}, {pipeline_mode = #tpu.pipeline_mode<synchronous>, transform_indices = @transform_2, window_bounds = array<i64: 128, 128>}, {pipeline_mode = #tpu.pipeline_mode<synchronous>, transform_indices = @transform_3, window_bounds = array<i64: 128, 128>}, {pipeline_mode = #tpu.pipeline_mode<synchronous>, transform_indices = @transform_4, window_bounds = array<i64: 1, 128>}, {transform_indices = @transform_5, window_bounds = array<i64: 1, 8, 128>}, {transform_indices = @transform_6, window_bounds = array<i64: 1, 8, 128>}]} {
    %c0 = arith.constant 0 : index
    %c0_0 = arith.constant 0 : index
    %c0_1 = arith.constant 0 : index
    %0 = vector.load %arg2[%c0, %c0_0, %c0_1] : memref<1x8x128xf32, #tpu.memory_space<vmem>>, vector<1x8x128xf32>
    %c0_2 = arith.constant 0 : index
    %c0_3 = arith.constant 0 : index
    %c0_4 = arith.constant 0 : index
    %1 = vector.load %arg3[%c0_2, %c0_3, %c0_4] : memref<1x128x128xf32, #tpu.memory_space<vmem>>, vector<1x128x128xf32>
    "tpu.trace_start"() <{level = 10 : i32, message = "bqh,bkh->bqk"}> : () -> ()
    %cst = arith.constant dense<0.000000e+00> : vector<1x8x128xf32>
    %2 = tpu.matmul %0, %1, %cst {dimension_numbers = #tpu.dot_dimension_numbers<[2], [2], [1], [1], [0, 0, 0, 1, 1, 1], [0], [0]>} : vector<1x8x128xf32>, vector<1x128x128xf32>, vector<1x8x128xf32> -> vector<1x8x128xf32>
    "tpu.trace_stop"() : () -> ()
    %3 = tpu.iota {dimensions = array<i32: 2>} : vector<1x8x128xi32>
    %c8_i32 = arith.constant 8 : i32
    %4 = vector.broadcast %c8_i32 : i32 to vector<1x8x128xi32>
    %5 = arith.cmpi slt, %3, %4 : vector<1x8x128xi32>
    %cst_5 = arith.constant 0xFF800000 : f32
    %6 = vector.broadcast %cst_5 : f32 to vector<1x8x128xf32>
    %7 = arith.select %5, %2, %6 : vector<1x8x128xi1>, vector<1x8x128xf32>
    %cst_6 = arith.constant dense<0xFF800000> : vector<1x8xf32>
    %8 = vector.multi_reduction <maximumf>, %7, %cst_6 [2] : vector<1x8x128xf32> to vector<1x8xf32>
    %9 = vector.shape_cast %8 : vector<1x8xf32> to vector<1x8x1xf32>
    %10 = vector.broadcast %9 : vector<1x8x1xf32> to vector<1x8x128xf32>
    %11 = arith.subf %7, %10 : vector<1x8x128xf32>
    %12 = math.exp %11 : vector<1x8x128xf32>
    %cst_7 = arith.constant dense<0.000000e+00> : vector<1x8xf32>
    %13 = vector.multi_reduction <add>, %12, %cst_7 [2] : vector<1x8x128xf32> to vector<1x8xf32>
    %14 = vector.shape_cast %13 : vector<1x8xf32> to vector<1x8x1xf32>
    %15 = tpu.reciprocal %14 : vector<1x8x1xf32> -> vector<1x8x1xf32>
    %16 = vector.broadcast %15 : vector<1x8x1xf32> to vector<1x8x128xf32>
    %17 = arith.mulf %12, %16 : vector<1x8x128xf32>
    "tpu.trace_start"() <{level = 10 : i32, message = "bqk,bkh->bqh"}> : () -> ()
    %cst_8 = arith.constant dense<0.000000e+00> : vector<1x8x128xf32>
    %18 = tpu.matmul %17, %1, %cst_8 {dimension_numbers = #tpu.dot_dimension_numbers<[2], [1], [1], [2], [0, 0, 0, 1, 1, 2], [0], [0]>} : vector<1x8x128xf32>, vector<1x128x128xf32>, vector<1x8x128xf32> -> vector<1x8x128xf32>
    "tpu.trace_stop"() : () -> ()
    %c0_9 = arith.constant 0 : index
    %c0_10 = arith.constant 0 : index
    %19 = vector.load %arg4[%c0_9, %c0_10] : memref<128x128xf32, #tpu.memory_space<vmem>>, vector<128x128xf32>
    %c0_11 = arith.constant 0 : index
    %c0_12 = arith.constant 0 : index
    %20 = vector.load %arg5[%c0_11, %c0_12] : memref<128x128xf32, #tpu.memory_space<vmem>>, vector<128x128xf32>
    %21 = vector.shape_cast %18 : vector<1x8x128xf32> to vector<8x128xf32>
    %22 = vector.shape_cast %0 : vector<1x8x128xf32> to vector<8x128xf32>
    %cst_13 = arith.constant dense<0.000000e+00> : vector<8x128xf32>
    %23 = tpu.matmul %21, %19, %cst_13 {dimension_numbers = #tpu.dot_dimension_numbers<[1], [0], [0], [1], [0, 0, 1, 1], [], []>} : vector<8x128xf32>, vector<128x128xf32>, vector<8x128xf32> -> vector<8x128xf32>
    %cst_14 = arith.constant dense<0.000000e+00> : vector<8x128xf32>
    %24 = tpu.matmul %22, %20, %cst_14 {dimension_numbers = #tpu.dot_dimension_numbers<[1], [0], [0], [1], [0, 0, 1, 1], [], []>} : vector<8x128xf32>, vector<128x128xf32>, vector<8x128xf32> -> vector<8x128xf32>
    %25 = arith.addf %23, %24 : vector<8x128xf32>
    %c0_15 = arith.constant 0 : index
    %c0_16 = arith.constant 0 : index
    %26 = vector.load %arg6[%c0_15, %c0_16] : memref<1x128xf32, #tpu.memory_space<vmem>>, vector<1x128xf32>
    %27 = vector.broadcast %26 : vector<1x128xf32> to vector<8x128xf32>
    %28 = arith.addf %25, %27 : vector<8x128xf32>
    %29 = math.tanh %28 : vector<8x128xf32>
    %30 = vector.shape_cast %29 : vector<8x128xf32> to vector<1x8x128xf32>
    %c0_17 = arith.constant 0 : index
    %c0_18 = arith.constant 0 : index
    %c0_19 = arith.constant 0 : index
    %31 = vector.load %arg7[%c0_17, %c0_18, %c0_19] : memref<1x8x128xf32, #tpu.memory_space<vmem>>, vector<1x8x128xf32>
    tpu.vector_store %arg7[%c0_17, %c0_18, %c0_19], %30 {strides = array<i32>} : memref<1x8x128xf32, #tpu.memory_space<vmem>>, vector<1x8x128xf32>,
    %c0_20 = arith.constant 0 : index
    %c0_21 = arith.constant 0 : index
    %c0_22 = arith.constant 0 : index
    %32 = vector.load %arg8[%c0_20, %c0_21, %c0_22] : memref<1x8x128xf32, #tpu.memory_space<vmem>>, vector<1x8x128xf32>
    tpu.vector_store %arg8[%c0_20, %c0_21, %c0_22], %17 {strides = array<i32>} : memref<1x8x128xf32, #tpu.memory_space<vmem>>, vector<1x8x128xf32>,
    return
  }
  func.func @transform_0(%arg0: i32, %arg1: i32) -> (i32, i32, i32) {
    %c0_i32 = arith.constant 0 : i32
    %c0_i32_0 = arith.constant 0 : i32
    return %arg0, %arg1, %c0_i32 : i32, i32, i32
  }
  func.func @transform_1(%arg0: i32, %arg1: i32) -> (i32, i32, i32) {
    %c0_i32 = arith.constant 0 : i32
    %c0_i32_0 = arith.constant 0 : i32
    %c0_i32_1 = arith.constant 0 : i32
    return %arg0, %c0_i32, %c0_i32_0 : i32, i32, i32
  }
  func.func @transform_2(%arg0: i32, %arg1: i32) -> (i32, i32) {
    %c0_i32 = arith.constant 0 : i32
    %c0_i32_0 = arith.constant 0 : i32
    %c0_i32_1 = arith.constant 0 : i32
    return %c0_i32, %c0_i32_0 : i32, i32
  }
  func.func @transform_3(%arg0: i32, %arg1: i32) -> (i32, i32) {
    %c0_i32 = arith.constant 0 : i32
    %c0_i32_0 = arith.constant 0 : i32
    %c0_i32_1 = arith.constant 0 : i32
    return %c0_i32, %c0_i32_0 : i32, i32
  }
  func.func @transform_4(%arg0: i32, %arg1: i32) -> (i32, i32) {
    %c0_i32 = arith.constant 0 : i32
    %c0_i32_0 = arith.constant 0 : i32
    %c0_i32_1 = arith.constant 0 : i32
    return %c0_i32, %c0_i32_0 : i32, i32
  }
  func.func @transform_5(%arg0: i32, %arg1: i32) -> (i32, i32, i32) {
    %c0_i32 = arith.constant 0 : i32
    %c0_i32_0 = arith.constant 0 : i32
    return %arg0, %arg1, %c0_i32 : i32, i32, i32
  }
  func.func @transform_6(%arg0: i32, %arg1: i32) -> (i32, i32, i32) {
    %c0_i32 = arith.constant 0 : i32
    %c0_i32_0 = arith.constant 0 : i32
    return %arg0, %arg1, %c0_i32 : i32, i32, i32
  }
}

</mosaic_0001>

<bundles_post_ra>
// kernel: tpu_custom_call.1
= control target key start
LH: loop header
LB: loop body
LE: loop exit
PB: predicated region body
PF: predicated region fallthrough
CT: control target
= control target key end

     0   :  { %s1364_s0 = inlined_call_operand.hbm [shape: f32[2,8,128], index: 0, kind: input, shape index: {}]   ;;  %s1365_s1 = inlined_call_operand.hbm [shape: f32[2,128,128], index: 1, kind: input, shape index: {}]   ;;  %s1366_s2 = inlined_call_operand.hbm [shape: f32[128,128], index: 2, kind: input, shape index: {}]   ;;  %s1367_s3 = inlined_call_operand.hbm [shape: f32[128,128], index: 3, kind: input, shape index: {}]   ;;  %s1368_s4 = inlined_call_operand.vmem [shape: f32[1,128], index: 4, kind: input, shape index: {}]   ;;  %s1369_s5 = inlined_call_operand.hbm [shape: f32[2,8,128], index: 5, kind: output, shape index: {0}]   ;;  %s1370_s6 = inlined_call_operand.hbm [shape: f32[2,8,128], index: 6, kind: output, shape index: {1}]  }
   0x1   :  { %1377 = sst [smem:[#allocation24_spill]] %s1366_s2 }
   0x2   :  { %1378 = sst [smem:[#allocation25_spill]] %s1367_s3 }
   0x3   :  { %12 = vsyncpa [#allocation3], 0 }
   0x4   :  { %14 = vsyncpa [#allocation3 + $0x1], 0 }
   0x5   :  { %15 = vsyncpa [#allocation6], 0 }
   0x6   :  { %17 = vsyncpa [#allocation6 + $0x1], 0 }
   0x7   :  { %18 = vsyncpa [#allocation9], 0 }
   0x8   :  { %19 = vsyncpa [#allocation4], 0 }
   0x9   :  { %21 = vsyncpa [#allocation4 + $0x1], 0 }
   0xa   :  { %22 = vsyncpa [#allocation12], 0 }
   0xb   :  { %24 = vsyncpa [#allocation12 + $0x1], 0  ;;  %s1144_s21 = smov 0   ;;  %s1146_s22 = smov 0  }
   0xc   :  { %s1148_s23 = smov 0   ;;  %s1150_s24 = smov 0  }
   0xd   :  { %s1152_s25 = smov 0   ;;  %s1154_s26 = smov 0  }
   0xe LB: > { %1379 = sst [smem:[#allocation19_spill]] %s1083_s21  ;;  %s1175_s27 = sadd.s32 4294967295, %s1103_s26   ;;  %s1103_s26 = sphi %s1154_s26, %s30_s26   ;;  %s1099_s25 = sphi %s1152_s25, %s1401_s25   ;;  %s1095_s24 = sphi %s1150_s24, %s1400_s24   ;;  %s1091_s23 = sphi %s1148_s23, %s1396_s23   ;;  %s1087_s22 = sphi %s1146_s22, %s1399_s22   ;;  %s1083_s21 = sphi %s1144_s21, %s1398_s21  }
   0xf   : > { %1380 = sst [smem:[#allocation20_spill]] %s1091_s23  ;;  %p732_p0 = scmp.ge.s32.totalorder %s1103_s26, 1 }
  0x10   : > { %p65_p1 = scmp.eq.s32.totalorder %s1175_s27, 0  ;;  %p220_p2 = scmp.lt.s32.totalorder %s1103_s26, 3 }
  0x11   : > { %s1381_s2 = sld [smem:[#allocation24_spill]]  ;;  %s1105_s8 = smov [#allocation7]  }
  0x12   : > { %p1183_p3 = pnand %p732_p0, %p220_p2  ;;  %s233_s9 = sshll.u32 %s1105_s8, 4  ;;  %s234_s9 = int_to_ptr.vmem [resolvable:$true] %s233_s9 }
  0x13   : > { %p735_p6 = scmp.ge.s32.totalorder %s1103_s26, 2  ;;  %s1383_s3 = sld [smem:[#allocation25_spill]] }
  0x14   : > { %p771_p4 = pneg %p1183_p3  ;;  %s1371_s13 = smov 128  }
  0x15   : > { %s1372_s14 = smov 8   ;;  %s1108_s15 = smov [#allocation8]  }
  0x16   : > { %p772_p5 = pnand %p771_p4, %p65_p1  ;;  %s247_s16 = sshll.u32 %s1108_s15, 4  ;;  %s248_s16 = int_to_ptr.vmem [resolvable:$true] %s247_s16 }
  0x17   : > { %s231_s30 = sshll.u32 %s1381_s2, 4  ;;  %s731_s17 = sadd.s32 4294967294, %s1103_s26   ;;  %s232_s30 = int_to_ptr.hbm [resolvable:$true] %s231_s30 }
  0x18   : > { %774 = dma.hbm_to_vmem [thread:$0]  (!%p772_p5), %s232_s30, 2048, %s234_s9, [#allocation6], %s1371_s13, %s1371_s13, %s1372_s14  }
  0x19   : > { %s245_s12 = sshll.u32 %s1383_s3, 4  ;;  %s42_s18 = sadd.s32 1, %s1099_s25  ;;  %s246_s12 = int_to_ptr.hbm [resolvable:$true] %s245_s12 }
  0x1a   : > { %777 = dma.hbm_to_vmem [thread:$0]  (!%p772_p5), %s246_s12, 2048, %s248_s16, [#allocation9], %s1371_s13, %s1371_s13, %s1372_s14  }
  0x1b   : > { %p44_p7 = scmp.ge.s32.totalorder %s42_s18, 2  ;;  %s51_s19 = sadd.s32 1, %s1091_s23 }
  0x1c   : > { %p58_p8 = scmp.ne.s32.totalorder %s1091_s23, %s1087_s22  ;;  %p59_p9 = scmp.eq.s32.totalorder %s1103_s26, 0 }
  0x1d   : > { %s1403_s18 = smov (%p44_p7, %s42_s18), 0  ;;  %p64_p11 = scmp.ne.s32.totalorder %s1087_s22, %s1083_s21 }
  0x1e   : > { %1384 = sst [smem:[#allocation21_spill]] %s1403_s18  ;;  %p1209_p10 = por %p59_p9, %p58_p8 }
  0x1f   : > { %s46_s28 = ssub.s32 %s1099_s25, %s1403_s18  ;;  %p179_p12 = scmp.eq.s32.totalorder %s1175_s27, 1 }
  0x20   : > { %p49_p13 = scmp.eq.s32.totalorder %s46_s28, 0  ;;  %p1220_p0 = por %p65_p1, %p64_p11 }
  0x21   : > { %p1224_p2 = por %p179_p12, %p58_p8  ;;  %p185_p4 = scmp.eq.s32.totalorder %s731_s17, 1 }
  0x22   : > { %s1229_s8 = scalar_select %p49_p13, %s1091_s23, %s51_s19  }
  0x23   : > { %p1231_p5 = por %p185_p4, %p64_p11  ;;  %p794_p7 = scmp.lt.s32.totalorder %s1103_s26, 2 }
  0x24   : > { %1388 = sst [smem:[#allocation22_spill]] %s1229_s8  ;;  %s264_s10 = sand.u32 1, %s1091_s23  }
  0x25   : > { %s1389_s9 = scalar_select %p1231_p5, 1, 0 }
  0x26   : > { %s737_s11 = sshll.u32 %s1099_s25, 3  ;;  %s736_s12 = sshll.u32 %s264_s10, 3 }
  0x27   : > { %1390 = sst [smem:[#allocation23_spill]] %s1389_s9  ;;  %s273_s28 = scalar_lea.hbm %s1364_s0, %s737_s11 }
  0x28   : > { %s275_s13 = sshll.u32 %s273_s28, 4  ;;  %s268_s14 = scalar_lea.vmem [#allocation2], %s736_s12  ;;  %s276_s13 = int_to_ptr.hbm [resolvable:$true] %s275_s13 }
  0x29   : > { %s277_s2 = sshll.u32 %s268_s14, 4  ;;  %p779_p8 = pnand %p794_p7, %p1209_p10  ;;  %s278_s2 = int_to_ptr.vmem [resolvable:$true] %s277_s2 }
  0x2a   : > { %s738_s17 = sshll.u32 %s264_s10, 7  ;;  %s754_s19 = sshll.u32 %s1099_s25, 7 }
  0x2b   : > { %s288_s3 = scalar_lea.vmem [#allocation5], %s738_s17  ;;  %s265_s8 = scalar_lea.sflag [#allocation3], %s264_s10 }
  0x2c   : > { %s296_s18 = sshll.u32 %s288_s3, 4  ;;  %s284_s23 = sand.u32 1, %s1103_s26   ;;  %s297_s18 = int_to_ptr.vmem [resolvable:$true] %s296_s18 }
  0x2d   : > { %781 = dma.hbm_to_vmem [thread:$0]  (!%p779_p8), %s276_s13, 128, %s278_s2, %s265_s8  }
  0x2e   : > { %s293_s15 = scalar_lea.hbm %s1365_s1, %s754_s19  ;;  %s285_s12 = scalar_lea.sflag [#allocation6], %s284_s23 }
  0x2f   : > { %s294_s11 = sshll.u32 %s293_s15, 4  ;;  %s1391_s14 = smov 8   ;;  %s295_s11 = int_to_ptr.hbm [resolvable:$true] %s294_s11 }
  0x30   : > { %s1392_s16 = smov 128   ;;  %308 = sbr.rel (%p1183_p3) target bundleno = 786 (0x312), region = 40 }
  0x31   : > { %784 = dma.hbm_to_vmem [thread:$0]  (!%p779_p8), %s295_s11, 2048, %s297_s18, %s285_s12, %s1392_s16, %s1392_s16, %s1391_s14  }
  0x32   : > { %s1254_s3 = sand.u32 (!%p1183_p3), 1, %s1087_s22  }
  0x33   : > { %s1257_s2 = sshll.u32 (!%p1183_p3), %s1254_s3, 3  ;;  %s311_s21 = scalar_lea.sflag (!%p1183_p3), [#allocation3], %s1254_s3 }
  0x34   : > { %s314_s13 = scalar_lea.vmem (!%p1183_p3), [#allocation2], %s1257_s2 }
  0x35   : > { %1058 = dma.done.wait (%p1220_p0), %s311_s21, 128  }
  0x36   : > { %1060 = vsyncadd (%p1220_p0), %s311_s21, 4294967168  ;;  %s320_s23 = sand.u32 1, %s1175_s27   ;;  %s743_s7 = sshll.u32 %s1254_s3, 7 }
  0x37   : > { %s321_s18 = scalar_lea.sflag [#allocation6], %s320_s23  ;;  %s1267_s20 = scalar_lea.vmem [#allocation5], %s743_s7 }
  0x38   : > { %1062 = dma.done.wait (%p1220_p0), %s321_s18, 2048  }
  0x39   : > { %1064 = vsyncadd (%p1220_p0), %s321_s18, 4294965248 }
  0x3a   : > { %1066 = dma.done.wait (%p65_p1), [#allocation6], 2048  }
  0x3b   : > { %1068 = vsyncadd (%p65_p1), [#allocation6], 4294965248 }
  0x3c   : > { %1070 = dma.done.wait (%p65_p1), [#allocation9], 2048  }
  0x3d   : > { %1072 = vsyncadd (%p65_p1), [#allocation9], 4294965248  ;;  %v390_v0 = vld [vmem:[%s1267_s20 + $0x78] sm:$0xff]  ;;  %v389_v1 = vld [vmem:[%s1267_s20 + $0x70] sm:$0xff]  ;;  %v411_v17 = vlaneseq  ;;  %s373_s27 = scalar_lea.vmem [#allocation11], %s1257_s2  ;;  %s750_s29 = sshll.u32 %s1095_s24, 3 }
  0x3e   : > { %391 = vmatpush.xpose.msra.mxu0 %v390_v0  ;;  %437 = vmatpush.msra.mxu1 %v390_v0  ;;  %v388_v2 = vld [vmem:[%s1267_s20 + $0x68] sm:$0xff]  ;;  %v387_v3 = vld [vmem:[%s1267_s20 + $0x60] sm:$0xff]  ;;  %v386_v4 = vld [vmem:[%s1267_s20 + $0x58] sm:$0xff]  ;;  %s569_s10 = scalar_lea.hbm %s1370_s6, %s750_s29  ;;  %s571_s28 = sshll.u32 %s373_s27, 4  ;;  %s572_s28 = int_to_ptr.vmem [resolvable:$true] %s571_s28 }
  0x3f   : > { %v385_v5 = vld [vmem:[%s1267_s20 + $0x50] sm:$0xff]  ;;  %v384_v6 = vld [vmem:[%s1267_s20 + $0x48] sm:$0xff]  ;;  %v383_v7 = vld [vmem:[%s1267_s20 + $0x40] sm:$0xff]  ;;  %v412_v18 = vand.u32 127, %v411_v17  ;;  %s573_s17 = sshll.u32 %s569_s10, 4  ;;  %s543_s19 = scalar_lea.sflag [#allocation12], %s1254_s3  ;;  %s574_s17 = int_to_ptr.hbm [resolvable:$true] %s573_s17 }
  0x40   : > { %438 = vmatpush.msra.mxu1 %v389_v1  ;;  %v382_v8 = vld [vmem:[%s1267_s20 + $0x38] sm:$0xff]  ;;  %v381_v9 = vld [vmem:[%s1267_s20 + $0x30] sm:$0xff]  ;;  %v380_v10 = vld [vmem:[%s1267_s20 + $0x28] sm:$0xff]  ;;  %s991_s15 = sshra.s32 %s574_s17, 4  ;;  %s997_s24 = scalar_lea.hbm %s1370_s6, 16  ;;  %s992_s15 = int_to_ptr.hbm [resolvable:$true] %s991_s15 }
  0x41   : > { %v379_v11 = vld [vmem:[%s1267_s20 + $0x20] sm:$0xff]  ;;  %v378_v12 = vld [vmem:[%s1267_s20 + $0x18] sm:$0xff]  ;;  %v377_v13 = vld [vmem:[%s1267_s20 + $0x10] sm:$0xff]  ;;  %vm413_vm0 = vcmp.lt.s32.totalorder %v412_v18, 8  ;;  %s993_s11 = scalar_lea.hbm %s992_s15, 8  ;;  %p998_p10 = scmp.lt.s32.totalorder %s992_s15, %s1370_s6 }
  0x42   : > { %392 = vmatpush.xpose.msra.mxu0 %v389_v1  ;;  %439 = vmatpush.msra.mxu1 %v388_v2  ;;  %v376_v14 = vld [vmem:[%s1267_s20 + $0x8] sm:$0xff]  ;;  %v375_v15 = vld [vmem:[%s1267_s20] sm:$0xff]  ;;  %v1299_v16 = vld [vmem:[%s314_s13] sm:$0xff]  ;;  %p994_p1 = scmp.ne.s32.totalorder %s992_s15, %s993_s11  ;;  %p999_p11 = scmp.lt.s32.totalorder %s997_s24, %s993_s11 }
  0x43   : > { %v488_v25 = vld [vmem:[#allocation8 + $0x78] sm:$0xff]  ;;  %v487_v27 = vld [vmem:[#allocation8 + $0x70] sm:$0xff]  ;;  %v486_v29 = vld [vmem:[#allocation8 + $0x68] sm:$0xff] }
  0x44   : > { %440 = vmatpush.msra.mxu1 %v387_v3  ;;  %v472_v26 = vld [vmem:[#allocation7 + $0x78] sm:$0xff]  ;;  %489 = vmatpush.msra.mxu2 %v488_v25  ;;  %v471_v28 = vld [vmem:[#allocation7 + $0x70] sm:$0xff]  ;;  %v470_v30 = vld [vmem:[#allocation7 + $0x68] sm:$0xff]  ;;  %p995_p3 = pnand %p994_p1, %p1224_p2  ;;  %p1000_p12 = por %p999_p11, %p998_p10 }
  0x45   : > { %509 = vmatpush.msra.mxu3 %v472_v26  ;;  %v485_v31 = vld [vmem:[#allocation8 + $0x60] sm:$0xff]  ;;  %v484_v33 = vld [vmem:[#allocation8 + $0x58] sm:$0xff]  ;;  %v483_v35 = vld [vmem:[#allocation8 + $0x50] sm:$0xff] }
  0x46   : > { %393 = vmatpush.xpose.msra.mxu0 %v388_v2  ;;  %441 = vmatpush.msra.mxu1 %v386_v4  ;;  %v469_v32 = vld [vmem:[#allocation7 + $0x60] sm:$0xff]  ;;  %v468_v34 = vld [vmem:[#allocation7 + $0x58] sm:$0xff]  ;;  %v467_v36 = vld [vmem:[#allocation7 + $0x50] sm:$0xff]  ;;  %p996_p9 = pneg %p995_p3 }
  0x47   : > { %490 = vmatpush.msra.mxu2 %v487_v27  ;;  %510 = vmatpush.msra.mxu3 %v471_v28  ;;  %v482_v37 = vld [vmem:[#allocation8 + $0x48] sm:$0xff]  ;;  %v481_v40 = vld [vmem:[#allocation8 + $0x40] sm:$0xff]  ;;  %v480_v42 = vld [vmem:[#allocation8 + $0x38] sm:$0xff] }
  0x48   : > { %442 = vmatpush.msra.mxu1 %v385_v5  ;;  %v466_v38 = vld [vmem:[#allocation7 + $0x48] sm:$0xff]  ;;  %v465_v41 = vld [vmem:[#allocation7 + $0x40] sm:$0xff]  ;;  %v464_v43 = vld [vmem:[#allocation7 + $0x38] sm:$0xff]  ;;  %p1001_p13 = pnand %p1000_p12, %p996_p9 }
  0x49   : > { %491 = vmatpush.msra.mxu2 %v486_v29  ;;  %511 = vmatpush.msra.mxu3 %v470_v30  ;;  %v479_v44 = vld [vmem:[#allocation8 + $0x30] sm:$0xff]  ;;  %v478_v46 = vld [vmem:[#allocation8 + $0x28] sm:$0xff]  ;;  %v477_v50 = vld [vmem:[#allocation8 + $0x20] sm:$0xff] }
  0x4a   : > { %394 = vmatpush.xpose.msra.mxu0 %v387_v3  ;;  %443 = vmatpush.msra.mxu1 %v384_v6  ;;  %v463_v45 = vld [vmem:[#allocation7 + $0x30] sm:$0xff]  ;;  %v462_v47 = vld [vmem:[#allocation7 + $0x28] sm:$0xff]  ;;  %v461_v51 = vld [vmem:[#allocation7 + $0x20] sm:$0xff] }
  0x4b   : > { %492 = vmatpush.msra.mxu2 %v485_v31  ;;  %512 = vmatpush.msra.mxu3 %v469_v32  ;;  %v476_v53 = vld [vmem:[#allocation8 + $0x18] sm:$0xff]  ;;  %v475_v58 = vld [vmem:[#allocation8 + $0x10] sm:$0xff]  ;;  %v474_v61 = vld [vmem:[#allocation8 + $0x8] sm:$0xff] }
  0x4c   : > { %444 = vmatpush.msra.mxu1 %v383_v7  ;;  %v460_v54 = vld [vmem:[#allocation7 + $0x18] sm:$0xff]  ;;  %v459_v59 = vld [vmem:[#allocation7 + $0x10] sm:$0xff]  ;;  %v458_v62 = vld [vmem:[#allocation7 + $0x8] sm:$0xff] }
  0x4d   : > { %493 = vmatpush.msra.mxu2 %v484_v33  ;;  %513 = vmatpush.msra.mxu3 %v468_v34  ;;  %v473_v3 = vld [vmem:[#allocation8] sm:$0xff] }
  0x4e   : > { %395 = vmatpush.xpose.msra.mxu0 %v386_v4  ;;  %445 = vmatpush.msra.mxu1 %v382_v8  ;;  %v457_v4 = vld [vmem:[#allocation7] sm:$0xff] }
  0x4f   : > { %494 = vmatpush.msra.mxu2 %v483_v35  ;;  %514 = vmatpush.msra.mxu3 %v467_v36 }
  0x50   : > { %446 = vmatpush.msra.mxu1 %v381_v9 }
  0x51   : > { %495 = vmatpush.msra.mxu2 %v482_v37  ;;  %515 = vmatpush.msra.mxu3 %v466_v38 }
  0x52   : > { %396 = vmatpush.xpose.msra.mxu0 %v385_v5  ;;  %447 = vmatpush.msra.mxu1 %v380_v10 }
  0x53   : > { %496 = vmatpush.msra.mxu2 %v481_v40  ;;  %516 = vmatpush.msra.mxu3 %v465_v41 }
  0x54   : > { %448 = vmatpush.msra.mxu1 %v379_v11 }
  0x55   : > { %497 = vmatpush.msra.mxu2 %v480_v42  ;;  %517 = vmatpush.msra.mxu3 %v464_v43 }
  0x56   : > { %397 = vmatpush.xpose.msra.mxu0 %v384_v6  ;;  %449 = vmatpush.msra.mxu1 %v378_v12 }
  0x57   : > { %498 = vmatpush.msra.mxu2 %v479_v44  ;;  %518 = vmatpush.msra.mxu3 %v463_v45 }
  0x58   : > { %450 = vmatpush.msra.mxu1 %v377_v13 }
  0x59   : > { %499 = vmatpush.msra.mxu2 %v478_v46  ;;  %519 = vmatpush.msra.mxu3 %v462_v47 }
  0x5a   : > { %398 = vmatpush.xpose.msra.mxu0 %v383_v7  ;;  %451 = vmatpush.msra.mxu1 %v376_v14 }
  0x5b   : > { %500 = vmatpush.msra.mxu2 %v477_v50  ;;  %520 = vmatpush.msra.mxu3 %v461_v51 }
  0x5c   : > { %452 = vmatpush.msra.mxu1 %v375_v15 }
  0x5d   : > { %501 = vmatpush.msra.mxu2 %v476_v53  ;;  %521 = vmatpush.msra.mxu3 %v460_v54 }
  0x5e   : > { %399 = vmatpush.xpose.msra.mxu0 %v382_v8 }
  0x5f   : > { %502 = vmatpush.msra.mxu2 %v475_v58  ;;  %522 = vmatpush.msra.mxu3 %v459_v59 }
  0x61   : > { %503 = vmatpush.msra.mxu2 %v474_v61  ;;  %523 = vmatpush.msra.mxu3 %v458_v62 }
  0x62   : > { %400 = vmatpush.xpose.msra.mxu0 %v381_v9 }
  0x63   : > { %504 = vmatpush.msra.mxu2 %v473_v3  ;;  %524 = vmatpush.msra.mxu3 %v457_v4 }
  0x64   : > { %505 = vmatmul.f32.vlgmr.msra.gmra.mxu2 %v1299_v16 }
  0x66   : > { %401 = vmatpush.xpose.msra.mxu0 %v380_v10 }
  0x6a   : > { %402 = vmatpush.xpose.msra.mxu0 %v379_v11 }
  0x6e   : > { %403 = vmatpush.xpose.msra.mxu0 %v378_v12 }
  0x72   : > { %404 = vmatpush.xpose.msra.mxu0 %v377_v13 }
  0x76   : > { %405 = vmatpush.xpose.msra.mxu0 %v376_v14 }
  0x7a   : > { %406 = vmatpush.xpose.msra.mxu0 %v375_v15 }
  0x7d   : > { %407 = vmatmul.f32.vlgmr.msra.gmra.mxu0 %v1299_v16 }
  0xfa   : > { %v408_v19 = vpop.f32.mrf.mxu0 }
  0xfb   : > { %v414_v20 = vsel %vm413_vm0, %v408_v19, -inf }
  0xfc   : > { %415 = vmax.xlane.f32.xlu0 %v414_v20 }
 0x16f   : > { %v416_v21 = vpop.xlane.xlu0 %415 }
 0x170   : > { %v417_v22 = vsub.f32 %v414_v20, %v416_v21 }
 0x172   : > { %v418_v23 = vmul.f32 1.442695, %v417_v22 }
 0x174   : > { %851 = vpow2.f32 %v418_v23 }
 0x17a   : > { %v1302_v24 = vpop.eup %851 }
 0x17b   : > { %420 = vadd.xlane.f32.xlu0 %v1302_v24 }
 0x1ee   : > { %v421_v39 = vpop.xlane.xlu0 %420 }
 0x1ef   : > { %853 = vrcp.f32 %v421_v39  ;;  %v433_v55 = vand.u32 2147483648, %v421_v39  ;;  %v431_v57 = vand.u32 2147483647, %v421_v39  ;;  %vm427_vm2 = vweird.f32 %v421_v39 }
 0x1f1   : > { %v434_v63 = vor.u32 1.1754944e-38, %v433_v55  ;;  %vm432_vm4 = vcmp.eq.f32.partialorder %v431_v57, 8.507059e+37 }
 0x1f5   : > { %v854_v48 = vpop.eup %853 }
 0x1f6   : > { %v423_v49 = vmul.f32 %v854_v48, %v421_v39  ;;  %vm428_vm1 = vweird.f32 %v854_v48 }
 0x1f7   : > { %vm429_vm3 = vmor %vm427_vm2, %vm428_vm1 }
 0x1f8   : > { %v424_v52 = vsub.f32 1.0, %v423_v49 }
 0x1fa   : > { %v425_v56 = vmul.f32 %v854_v48, %v424_v52 }
 0x1fc   : > { %v426_v60 = vadd.f32 %v854_v48, %v425_v56 }
 0x1fe   : > { %v430_v0 = vsel %vm429_vm3, %v854_v48, %v426_v60 }
 0x1ff   : > { %v435_v1 = vsel %vm432_vm4, %v434_v63, %v430_v0 }
 0x200   : > { %v436_v2 = vmul.f32 %v1302_v24, %v435_v1 }
 0x202   : > { %453 = vmatmul.f32.vlgmr.msra.gmra.mxu1 %v436_v2  ;;  %536 = vst [vmem:[%s373_s27] sm:$0xff] %v436_v2 }
 0x27f   : > { %v454_v5 = vpop.f32.mrf.mxu1 }
 0x280   : > { %525 = vmatmul.f32.vlgmr.msra.gmra.mxu3 %v454_v5 }
 0x281   : > { %1004 = shalt.err (!%p1001_p13)
}
 0x282   : > { %768 = dma.vmem_to_hbm [thread:$0]  (%p1224_p2), %s572_s28, 128, %s574_s17, %s543_s19   ;;  %v506_v6 = vpop.f32.mrf.mxu2  ;;  %v850_v7 = vld [vmem:[%s1368_s4] ss:$0 sm:$0xff] }
 0x283   : > { %s554_s20 = scalar_lea.hbm %s1369_s5, %s750_s29  ;;  %s366_s27 = scalar_lea.vmem [#allocation10], %s1257_s2 }
 0x284   : > { %s556_s8 = sshll.u32 %s366_s27, 4  ;;  %s558_s9 = sshll.u32 %s554_s20, 4  ;;  %s557_s8 = int_to_ptr.vmem [resolvable:$true] %s556_s8  ;;  %s559_s9 = int_to_ptr.hbm [resolvable:$true] %s558_s9 }
 0x285   : > { %s538_s10 = scalar_lea.sflag [#allocation4], %s1254_s3  ;;  %s1019_s28 = sshra.s32 %s559_s9, 4  ;;  %s1020_s28 = int_to_ptr.hbm [resolvable:$true] %s1019_s28 }
 0x286   : > { %s1021_s17 = scalar_lea.hbm %s1020_s28, 8  ;;  %s1025_s29 = scalar_lea.hbm %s1369_s5, 16 }
 0x287   : > { %p1022_p0 = scmp.ne.s32.totalorder %s1020_s28, %s1021_s17  ;;  %p1026_p8 = scmp.lt.s32.totalorder %s1020_s28, %s1369_s5 }
 0x288   : > { %p1027_p1 = scmp.lt.s32.totalorder %s1025_s29, %s1021_s17 }
 0x289   : > { %p1023_p4 = pnand %p1022_p0, %p1224_p2 }
 0x28a   : > { %p1028_p3 = por %p1027_p1, %p1026_p8 }
 0x28b   : > { %p1024_p7 = pneg %p1023_p4 }
 0x28d   : > { %p1029_p9 = pnand %p1028_p3, %p1024_p7 }
 0x303   : > { %v526_v8 = vpop.f32.mrf.mxu3 }
 0x304   : > { %v527_v9 = vadd.f32 %v526_v8, %v506_v6 }
 0x306   : > { %v533_v10 = vadd.f32 %v850_v7, %v527_v9 }
 0x308   : > { %855 = vtanh.f32 %v533_v10 }
 0x30e   : > { %v856_v11 = vpop.eup %855 }
 0x30f   : > { %535 = vst [vmem:[%s366_s27] sm:$0xff] %v856_v11 }
 0x310   : > { %1032 = shalt.err (!%p1029_p9)
}
 0x311   : > { %767 = dma.vmem_to_hbm [thread:$0]  (%p1224_p2), %s557_s8, 128, %s559_s9, %s538_s10  }
 0x312 PF: > { %s1393_s3 = sld [smem:[#allocation19_spill]]  ;;  %p786_p10 = pnand %p735_p6, %p1231_p5 }
 0x314   : > { %p787_p11 = pneg %p786_p10 }
 0x318   : > { %s585_s14 = sand.u32 1, %s1393_s3  }
 0x319   : > { %s586_s24 = scalar_lea.sflag [#allocation4], %s585_s14 }
 0x31a   : > { %1074 = dma.done.wait (%p787_p11), %s586_s24, 128  }
 0x31b   : > { %1076 = vsyncadd (%p787_p11), %s586_s24, 4294967168  ;;  %s596_s16 = scalar_lea.sflag [#allocation12], %s585_s14 }
 0x31c   : > { %1078 = dma.done.wait (%p787_p11), %s596_s16, 128  }
 0x31d   : > { %1080 = vsyncadd (%p787_p11), %s596_s16, 4294967168  ;;  %s30_s26 = sadd.s32 1, %s1103_s26   ;;  %s1395_s30 = sld [smem:[#allocation20_spill]] }
 0x31e   : > { %p27_p12 = scmp.ge.s32.totalorder %s30_s26, 4   ;;  %s1396_s23 = sld [smem:[#allocation22_spill]] }
 0x31f   : > { %s1397_s13 = sld [smem:[#allocation21_spill]]  ;;  %s1398_s21 = smov %s1087_s22 }
 0x320   : > { %s1400_s24 = smov %s1099_s25 }
 0x321   :  { %29 = sbr.rel (!%p27_p12) target bundleno = 14 (0xe), region = 123 }
 0x323   : > { %s1399_s22 = smov %s1395_s30 }
 0x325   : > { %s1401_s25 = smov %s1397_s13 }
 0x326   :  { %602 = vsyncpa [#allocation3], 1 }
 0x327   :  { %604 = vsyncpa [#allocation3 + $0x1], 1 }
 0x328   :  { %605 = vsyncpa [#allocation6], 1 }
 0x329   :  { %607 = vsyncpa [#allocation6 + $0x1], 1 }
 0x32a   :  { %608 = vsyncpa [#allocation9], 1 }
 0x32b   :  { %609 = vsyncpa [#allocation4], 1 }
 0x32c   :  { %611 = vsyncpa [#allocation4 + $0x1], 1 }
 0x32d   :  { %612 = vsyncpa [#allocation12], 1 }
 0x32e   :  { %614 = vsyncpa [#allocation12 + $0x1], 1 }

</bundles_post_ra>
